<compile_context>
chip_gen: v7x
topology: tpu7x:2x2x1
jax: 0.10.0
libtpu: 0.0.40
codegen_flags: <defaults>
</compile_context>

<pallas_src>
import functools

import jax
import jax.numpy as jnp
from jax import lax
from jax.experimental import pallas as pl
from jax.experimental.pallas import tpu as pltpu


def _cdiv(a, b):
    return -(-a // b)


def _round_up(x, m):
    return _cdiv(x, m) * m


def _gap_kernel(x_ref, o_ref, acc_ref, *, inv_hw, hw, col_tile, use_mxu, mask_tail):
    """Per-row mean over the lane (last) axis with an f32 accumulator.

    Grid axis 0 tiles the N*C rows (parallel / megacore-shardable);
    grid axis 1 tiles the H*W reduction axis (arbitrary, reduction-last).
    """
    k = pl.program_id(1)

    @pl.when(k == 0)
    def _():
        acc_ref[...] = jnp.zeros_like(acc_ref)

    x = x_ref[...]
    if use_mxu:
        # Row-sum on the MXU: x @ ones -> every output lane holds the row sum.
        # Lane-dense (row_tile, 128) accumulator; XLU/VPU stay free for the
        # HBM-bound pipeline. HIGHEST precision keeps f32 sums ~exact.
        if x.dtype == jnp.float32:
            ones = jnp.ones((x.shape[-1], 128), jnp.float32)
            acc_ref[...] += jnp.dot(x, ones,
                                    preferred_element_type=jnp.float32,
                                    precision=lax.Precision.HIGHEST)
        else:
            ones = jnp.ones((x.shape[-1], 128), x.dtype)  # exact: products are x*1
            acc_ref[...] += jnp.dot(x, ones, preferred_element_type=jnp.float32)
    else:
        x = x.astype(jnp.float32)
        if mask_tail:
            # Reduction-axis tail of the last block is out-of-bounds garbage
            # (we never pad in HBM) -> zero it before summing.
            lane = lax.broadcasted_iota(jnp.int32, x.shape, 1)
            x = jnp.where(k * col_tile + lane < hw, x, 0.0)
        acc_ref[...] += jnp.sum(x, axis=-1, keepdims=True)

    @pl.when(k == pl.num_programs(1) - 1)
    def _():
        acc = acc_ref[...]
        if use_mxu:
            acc = acc[:, :1]
        o_ref[...] = (acc * inv_hw).astype(o_ref.dtype)


def _plan(rows, hw, itemsize, target_block_bytes=None):
    """Pick (row_tile, col_tile, vmem_limit) for the current TPU generation."""
    granule = {4: 8, 2: 16, 1: 32}.get(itemsize, 8)   # sublane packing per dtype

    # Per-generation budgets: v5e/v6e have 128 MiB VMEM, v7x has 64 MiB per TC.
    try:
        vmem_cap = pltpu.get_tpu_info().vmem_capacity_bytes
    except Exception:
        vmem_cap = 64 * 1024 * 1024                   # conservative (v7x-like)
    if vmem_cap >= 100 * 1024 * 1024:                 # v5e / v6e
        hbm_target = 16 * 1024 * 1024                 # HBM bytes moved per grid step
        vmem_limit = 96 * 1024 * 1024
    else:                                             # v7x (or unknown)
        hbm_target = 10 * 1024 * 1024
        vmem_limit = 48 * 1024 * 1024
    if target_block_bytes is not None:                # test-only override
        hbm_target = target_block_bytes
    vmem_budget = vmem_limit - 8 * 1024 * 1024        # headroom for compiler scratch

    # Column (reduction) tile: keep the full H*W unless even a granule-row
    # block would exceed the HBM target; then split into ~target-sized chunks
    # rounded to 128 lanes (tail is masked in-kernel, never zero-padded in HBM).
    lanes_full = _round_up(hw, 128)
    if lanes_full * granule * itemsize > hbm_target:
        n_col_blocks = _cdiv(lanes_full * granule * itemsize, hbm_target)
        col_tile = _round_up(_cdiv(hw, n_col_blocks), 128)
    else:
        col_tile = hw

    # Row tile: sized from the actual HBM payload per step, capped by the VMEM
    # footprint (2 double-buffered input blocks + f32 acc + output block).
    lanes = _round_up(col_tile, 128)
    vmem_per_row = 2 * lanes * itemsize + 128 * 4 + 2 * 128 * itemsize
    row_from_target = max(granule,
                          hbm_target // (col_tile * itemsize) // granule * granule)
    row_from_vmem = max(granule, vmem_budget // vmem_per_row // granule * granule)
    row_tile = min(row_from_target, row_from_vmem, _round_up(rows, granule))

    # Megacore (v7x has 2 TensorCores): keep >= 2 tiles on the parallel axis.
    while row_tile > granule and _cdiv(rows, row_tile) < 2:
        row_tile = max(granule, _round_up(row_tile // 2, granule))

    return row_tile, col_tile, vmem_limit


def my_global_avg_pool2d(x, keep_dim=True, *, _target_block_bytes=None,
                         _mxu_max_hw=2048):
    """Pallas equivalent of MyGlobalAvgPool2d.forward on NCHW input."""
    if not jnp.issubdtype(x.dtype, jnp.floating):
        # torch.mean raises on integer dtypes; mirror that instead of truncating.
        raise TypeError("my_global_avg_pool2d requires a floating dtype, got %s" % x.dtype)

    n, c, h, w = x.shape
    rows, hw = n * c, h * w
    itemsize = jnp.dtype(x.dtype).itemsize

    row_tile, col_tile, vmem_limit = _plan(rows, hw, itemsize, _target_block_bytes)
    use_mxu = (col_tile == hw) and (8 <= hw <= _mxu_max_hw)
    mask_tail = (hw % col_tile) != 0                  # only possible when col-tiled

    x2d = x.reshape(rows, hw)                         # metadata-only reshape, no copy
    grid = (_cdiv(rows, row_tile), _cdiv(hw, col_tile))
    acc_shape = (row_tile, 128) if use_mxu else (row_tile, 1)

    out2d = pl.pallas_call(
        functools.partial(_gap_kernel, inv_hw=1.0 / float(hw), hw=hw,
                          col_tile=col_tile, use_mxu=use_mxu, mask_tail=mask_tail),
        out_shape=jax.ShapeDtypeStruct((rows, 1), x.dtype),
        grid_spec=pltpu.PrefetchScalarGridSpec(
            num_scalar_prefetch=0,
            grid=grid,
            in_specs=[pl.BlockSpec((row_tile, col_tile), lambda i, k: (i, k))],
            out_specs=pl.BlockSpec((row_tile, 1), lambda i, k: (i, 0)),
            scratch_shapes=[pltpu.VMEM(acc_shape, jnp.float32)],
        ),
        compiler_params=pltpu.CompilerParams(
            dimension_semantics=("parallel", "arbitrary"),
            vmem_limit_bytes=vmem_limit,
        ),
        cost_estimate=pl.CostEstimate(
            flops=2 * rows * hw,
            transcendentals=0,
            bytes_accessed=rows * hw * itemsize + rows * itemsize,
        ),
    )(x2d)

    if keep_dim:
        return out2d.reshape(n, c, 1, 1)
    return out2d.reshape(n, c)


if __name__ == "__main__":
    key = jax.random.PRNGKey(0)

    # Primary check: small NCHW shape (MXU-reduce path, hw=256).
    x = jax.random.normal(key, (2, 4, 16, 16), dtype=jnp.float32)
    out_keep = my_global_avg_pool2d(x, keep_dim=True)
    out_flat = my_global_avg_pool2d(x, keep_dim=False)
    jax.block_until_ready(out_keep)
    jax.block_until_ready(out_flat)
    ref = x.mean(axis=3, keepdims=True).mean(axis=2, keepdims=True)
    assert out_keep.shape == (2, 4, 1, 1)
    assert out_flat.shape == (2, 4)
    assert jnp.allclose(out_keep, ref, atol=1e-5, rtol=1e-5)
    assert jnp.allclose(out_flat, ref.reshape(2, 4), atol=1e-5, rtol=1e-5)

    # Rows not a multiple of 8 + odd spatial: exercises the unpadded row tail
    # (garbage rows dropped on store) and an odd contracting dim on the MXU.
    x2 = jax.random.normal(jax.random.PRNGKey(0), (2, 3, 7, 7), dtype=jnp.float32)
    out2 = my_global_avg_pool2d(x2, keep_dim=True)
    jax.block_until_ready(out2)
    ref2 = x2.mean(axis=3, keepdims=True).mean(axis=2, keepdims=True)
    assert jnp.allclose(out2, ref2, atol=1e-5, rtol=1e-5)

    # Force the column-tiled XLU path with an in-kernel reduction-tail mask
    # (production only hits this for very large H*W; shrink the block target).
    x3 = jax.random.normal(jax.random.PRNGKey(0), (2, 4, 16, 20), dtype=jnp.float32)
    out3 = my_global_avg_pool2d(x3, keep_dim=True,
                                _target_block_bytes=4096, _mxu_max_hw=0)
    jax.block_until_ready(out3)
    ref3 = x3.mean(axis=3, keepdims=True).mean(axis=2, keepdims=True)
    assert jnp.allclose(out3, ref3, atol=1e-5, rtol=1e-5)

    # bf16 input through the MXU path (exact: products are x * 1.0, f32 accum).
    x4 = jax.random.normal(jax.random.PRNGKey(0), (2, 4, 8, 8), dtype=jnp.bfloat16)
    out4 = my_global_avg_pool2d(x4, keep_dim=False)
    jax.block_until_ready(out4)
    ref4 = x4.astype(jnp.float32).mean(axis=(2, 3)).astype(jnp.bfloat16)
    assert jnp.allclose(out4.astype(jnp.float32), ref4.astype(jnp.float32),
                        atol=2e-2, rtol=2e-2)

    print("KERNEL_OK")
</pallas_src>

<mosaic_0001>
module attributes {stable_mosaic.version = 11 : i64} {
  func.func @_gap_kernel(%arg0: i32, %arg1: i32, %arg2: memref<8x256xf32, #tpu.memory_space<vmem>>, %arg3: memref<8x1xf32, #tpu.memory_space<vmem>>, %arg4: memref<8x128xf32, #tpu.memory_space<vmem>>) attributes {dimension_semantics = [#tpu.dimension_semantics<parallel>, #tpu.dimension_semantics<arbitrary>], iteration_bounds = array<i64: 1, 1>, scalar_prefetch = 0 : i64, scratch_operands = 1 : i64, tpu.core_type = #tpu.core_type<tc>, window_params = [{transform_indices = @transform_0, window_bounds = array<i64: 8, 256>}, {transform_indices = @transform_1, window_bounds = array<i64: 8, 1>}]} {
    %c0_i32 = arith.constant 0 : i32
    %0 = arith.cmpi eq, %arg1, %c0_i32 : i32
    %1 = arith.extui %0 : i1 to i32
    %c0_i32_0 = arith.constant 0 : i32
    %2 = arith.cmpi ne, %1, %c0_i32_0 : i32
    scf.if %2 {
      %cst_9 = arith.constant 0.000000e+00 : f32
      %12 = vector.broadcast %cst_9 : f32 to vector<8x128xf32>
      %c0_10 = arith.constant 0 : index
      %c0_11 = arith.constant 0 : index
      %13 = vector.load %arg4[%c0_10, %c0_11] : memref<8x128xf32, #tpu.memory_space<vmem>>, vector<8x128xf32>
      tpu.vector_store %arg4[%c0_10, %c0_11], %12 {strides = array<i32>} : memref<8x128xf32, #tpu.memory_space<vmem>>, vector<8x128xf32>,
    } else {
    }
    %c0 = arith.constant 0 : index
    %c0_1 = arith.constant 0 : index
    %3 = vector.load %arg2[%c0, %c0_1] : memref<8x256xf32, #tpu.memory_space<vmem>>, vector<8x256xf32>
    %cst = arith.constant 1.000000e+00 : f32
    %4 = vector.broadcast %cst : f32 to vector<256x128xf32>
    %c0_2 = arith.constant 0 : index
    %c0_3 = arith.constant 0 : index
    %5 = vector.load %arg4[%c0_2, %c0_3] : memref<8x128xf32, #tpu.memory_space<vmem>>, vector<8x128xf32>
    %cst_4 = arith.constant dense<0.000000e+00> : vector<8x128xf32>
    %6 = tpu.matmul %3, %4, %cst_4 {dimension_numbers = #tpu.dot_dimension_numbers<[1], [0], [0], [1], [0, 0, 1, 1], [], []>, precision = #tpu.contract_precision<fp32>} : vector<8x256xf32>, vector<256x128xf32>, vector<8x128xf32> -> vector<8x128xf32>
    %7 = arith.addf %5, %6 : vector<8x128xf32>
    %c0_5 = arith.constant 0 : index
    %c0_6 = arith.constant 0 : index
    %8 = vector.load %arg4[%c0_5, %c0_6] : memref<8x128xf32, #tpu.memory_space<vmem>>, vector<8x128xf32>
    tpu.vector_store %arg4[%c0_5, %c0_6], %7 {strides = array<i32>} : memref<8x128xf32, #tpu.memory_space<vmem>>, vector<8x128xf32>,
    %c0_i32_7 = arith.constant 0 : i32
    %9 = arith.cmpi eq, %arg1, %c0_i32_7 : i32
    %10 = arith.extui %9 : i1 to i32
    %c0_i32_8 = arith.constant 0 : i32
    %11 = arith.cmpi ne, %10, %c0_i32_8 : i32
    scf.if %11 {
      %c0_9 = arith.constant 0 : index
      %c0_10 = arith.constant 0 : index
      %12 = vector.load %arg4[%c0_9, %c0_10] : memref<8x128xf32, #tpu.memory_space<vmem>>, vector<8x128xf32>
      %13 = vector.extract_strided_slice %12 {offsets = [0, 0], sizes = [8, 1], strides = [1, 1]} : vector<8x128xf32> to vector<8x1xf32>
      %cst_11 = arith.constant 3.906250e-03 : f32
      %14 = vector.broadcast %cst_11 : f32 to vector<8x1xf32>
      %15 = arith.mulf %13, %14 : vector<8x1xf32>
      %c0_12 = arith.constant 0 : index
      %c0_13 = arith.constant 0 : index
      %16 = vector.load %arg3[%c0_12, %c0_13] : memref<8x1xf32, #tpu.memory_space<vmem>>, vector<8x1xf32>
      tpu.vector_store %arg3[%c0_12, %c0_13], %15 {strides = array<i32>} : memref<8x1xf32, #tpu.memory_space<vmem>>, vector<8x1xf32>,
    } else {
    }
    return
  }
  func.func @transform_0(%arg0: i32, %arg1: i32) -> (i32, i32) {
    %c0_i32 = arith.constant 0 : i32
    return %arg0, %arg1 : i32, i32
  }
  func.func @transform_1(%arg0: i32, %arg1: i32) -> (i32, i32) {
    %c0_i32 = arith.constant 0 : i32
    %c0_i32_0 = arith.constant 0 : i32
    return %arg0, %c0_i32 : i32, i32
  }
}

</mosaic_0001>

<bundles_post_ra>
// kernel: tpu_custom_call.1
= control target key start
LH: loop header
LB: loop body
LE: loop exit
PB: predicated region body
PF: predicated region fallthrough
CT: control target
= control target key end

     0   :  { %6 = vsyncpa [#allocation4], 0  ;;  %s668_s6 = smov [#allocation3]   ;;  %s756_s0 = inlined_call_operand.hbm [shape: f32[8,256], index: 0, kind: input, shape index: {}]   ;;  %s757_s1 = inlined_call_operand.vmem [shape: f32[8,1], index: 1, kind: output, shape index: {}]  }
   0x1   :  { %s13_s7 = sshll.u32 %s668_s6, 4  ;;  %s644_s10 = scalar_lea.hbm %s756_s0, 256  ;;  %s14_s7 = int_to_ptr.vmem [resolvable:$true] %s13_s7 }
   0x2   :  { %p645_p0 = scmp.ne.s32.totalorder %s756_s0, %s644_s10  ;;  %p648_p1 = scmp.lt.u32.totalorder %s644_s10, %s756_s0 }
   0x4   :  { %p650_p2 = pnand %p648_p1, %p645_p0 }
   0x6   :  { %653 = shalt.err (!%p650_p2)
}
   0x7   :  { %s654_s15 = scalar_lea.vmem %s14_s7, 256  ;;  %p659_p4 = scmp.lt.s32.totalorder %s14_s7, %s14_s7 }
   0x8   :  { %p655_p3 = scmp.ne.s32.totalorder %s14_s7, %s654_s15  ;;  %p660_p5 = scmp.lt.s32.totalorder %s654_s15, %s654_s15 }
   0xa   :  { %p661_p6 = por %p660_p5, %p659_p4 }
   0xc   :  { %p662_p7 = pnand %p661_p6, %p655_p3 }
   0xe   :  { %665 = shalt.err (!%p662_p7)
}
   0xf   :  { %16 = dma.hbm_to_vmem [thread:$0]  %s756_s0, 256, %s14_s7, [#allocation4]  }
  0x10   :  { %666 = dma.done.wait [#allocation4], 256  }
  0x11   :  { %667 = vsyncadd [#allocation4], 4294967040  ;;  %v669_v0 = vmov 1.0|1.0   ;;  %v670_v1 = vmov 0.0   ;;  %v26_v2 = vld [vmem:[#allocation3 + $0x8] sm:$0xff] }
  0x12   :  { %593 = vmatprep.subr.bf16.mxu0 %v669_v0  ;;  %108 = vmatprep.subr.mxu1 %v670_v1  ;;  %v25_v3 = vld [vmem:[#allocation3] sm:$0xff]  ;;  %v92_v4 = vand.u32 4294901760, %v26_v2  ;;  %vm481_vm0 = vcmask 7168  }
  0x13   :  { %594 = vmatpush3.bf16.msra.mxu0 %v669_v0  ;;  %109 = vmatpush1.msra.mxu1 %v670_v1  ;;  %v701_v5 = vand.u32 4294901760, %v25_v3 }
  0x14   :  { %595 = vmatprep.subr.bf16.mxu0 %v669_v0  ;;  %180 = vmatprep.subr.mxu1 %v670_v1  ;;  %v93_v6 = vsub.f32 %v26_v2, %v92_v4 }
  0x15   :  { %173 = vmatprep.mubr.f32.mxu1 %v92_v4  ;;  %v99_v7 = vsub.f32 %v25_v3, %v701_v5 }
  0x16   :  { %175 = vmatmul.mubr.f32.vlgmr.msra.gmra.mrb[0].mxu1 %v701_v5  ;;  %v94_v8 = vand.u32 4294901760, %v93_v6 }
  0x17   :  { %596 = vmatpush3.bf16.msra.mxu0 %v669_v0  ;;  %181 = vmatpush1.msra.mxu1 %v670_v1  ;;  %v100_v11 = vand.u32 4294901760, %v99_v7 }
  0x18   :  { %597 = vmatprep.subr.bf16.mxu0 %v669_v0  ;;  %246 = vmatprep.mubr.f32.mxu1 %v93_v6  ;;  %v95_v9 = vsub.f32 %v93_v6, %v94_v8 }
  0x19   :  { %609 = vmatprep.subr.bf16.mxu1 %v669_v0  ;;  %v101_v12 = vsub.f32 %v99_v7, %v100_v11 }
  0x1a   :  { %249 = vmatmul.mubr.f32.vlgmr.msra.gmra.mrb[2].mxu1 %v99_v7  ;;  %v96_v10 = vand.u32 4294901760, %v95_v9 }
  0x1b   :  { %598 = vmatpush3.bf16.msra.mxu0 %v669_v0  ;;  %610 = vmatpush3.bf16.msra.mxu1 %v669_v0  ;;  %v102_v13 = vand.u32 4294901760, %v101_v12 }
  0x1c   :  { %599 = vmatprep.subr.bf16.mxu0 %v669_v0  ;;  %321 = vmatprep.mubr.f32.mxu1 %v94_v8 }
  0x1d   :  { %611 = vmatprep.subr.bf16.mxu1 %v669_v0  ;;  %97 = vmatprep.mubr.f32.mxu0 %v96_v10 }
  0x1f   :  { %600 = vmatpush3.bf16.msra.mxu0 %v669_v0  ;;  %612 = vmatpush3.bf16.msra.mxu1 %v669_v0 }
  0x20   :  { %601 = vmatprep.subr.bf16.mxu0 %v669_v0  ;;  %613 = vmatprep.subr.bf16.mxu1 %v669_v0 }
  0x23   :  { %602 = vmatpush3.bf16.msra.mxu0 %v669_v0  ;;  %614 = vmatpush3.bf16.msra.mxu1 %v669_v0 }
  0x24   :  { %603 = vmatprep.subr.bf16.mxu0 %v669_v0  ;;  %615 = vmatprep.subr.bf16.mxu1 %v669_v0 }
  0x27   :  { %604 = vmatpush3.bf16.msra.mxu0 %v669_v0  ;;  %616 = vmatpush3.bf16.msra.mxu1 %v669_v0 }
  0x28   :  { %605 = vmatprep.subr.bf16.mxu0 %v669_v0  ;;  %617 = vmatprep.subr.bf16.mxu1 %v669_v0 }
  0x2b   :  { %606 = vmatpush3.bf16.msra.mxu0 %v669_v0  ;;  %618 = vmatpush3.bf16.msra.mxu1 %v669_v0 }
  0x2c   :  { %607 = vmatprep.subr.bf16.mxu0 %v669_v0  ;;  %619 = vmatprep.subr.bf16.mxu1 %v669_v0 }
  0x2f   :  { %608 = vmatpush3.bf16.msra.mxu0 %v669_v0  ;;  %620 = vmatpush3.bf16.msra.mxu1 %v669_v0 }
  0x30   :  { %625 = vmatprep.subr.bf16.mxu0 %v669_v0  ;;  %621 = vmatprep.subr.bf16.mxu1 %v669_v0 }
  0x32   :  { %103 = vmatmul.mubr.f32.vlgmr.msra.gmra.mrb[0].mxu0 %v102_v13 }
  0x33   :  { %626 = vmatpush3.bf16.msra.mxu0 %v669_v0  ;;  %467 = vmatprep.mubr.f32.mxu0 %v92_v4 }
  0x34   :  { %627 = vmatprep.subr.bf16.mxu0 %v669_v0  ;;  %622 = vmatpush3.bf16.msra.mxu1 %v669_v0 }
  0x35   :  { %623 = vmatprep.subr.bf16.mxu1 %v669_v0 }
  0x37   :  { %628 = vmatpush3.bf16.msra.mxu0 %v669_v0 }
  0x38   :  { %629 = vmatprep.subr.bf16.mxu0 %v669_v0  ;;  %624 = vmatpush3.bf16.msra.mxu1 %v669_v0 }
  0x39   :  { %330 = vmatprep.subr.mxu1 %v670_v1 }
  0x3b   :  { %630 = vmatpush3.bf16.msra.mxu0 %v669_v0  ;;  %325 = vmatmul.mubr.f32.vlgmr.msra.gmra.mrb[4].mxu1 %v100_v11 }
  0x3c   :  { %631 = vmatprep.subr.bf16.mxu0 %v669_v0  ;;  %331 = vmatpush1.msra.mxu1 %v670_v1 }
  0x3d   :  { %395 = vmatprep.mubr.f32.mxu1 %v92_v4 }
  0x3f   :  { %632 = vmatpush3.bf16.msra.mxu0 %v669_v0  ;;  %397 = vmatmul.mubr.f32.vlgmr.msra.gmra.mrb[6].mxu1 %v701_v5 }
  0x40   :  { %633 = vmatprep.subr.bf16.mxu0 %v669_v0 }
  0x43   :  { %634 = vmatpush3.bf16.msra.mxu0 %v669_v0 }
  0x44   :  { %635 = vmatprep.subr.bf16.mxu0 %v669_v0 }
  0x47   :  { %636 = vmatpush3.bf16.msra.mxu0 %v669_v0 }
  0x48   :  { %637 = vmatprep.subr.bf16.mxu0 %v669_v0 }
  0x4b   :  { %638 = vmatpush3.bf16.msra.mxu0 %v669_v0 }
  0x4c   :  { %639 = vmatprep.subr.bf16.mxu0 %v669_v0 }
  0x4f   :  { %640 = vmatpush3.bf16.msra.mxu0 %v669_v0 }
  0x52   :  { %469 = vmatmul.mubr.f32.vlgmr.msra.gmra.mrb[2].mxu0 %v701_v5 }
  0xe9   :  { %v176_v14 = vpop.f32.mrb[0].mxu1 }
  0xea   :  { %v178_v15 = vpop.f32.mrb[1].mxu1 }
  0xed   :  { %v250_v16 = vpop.f32.mrb[2].mxu1 }
  0xee   :  { %v252_v17 = vpop.f32.mrb[3].mxu1 }
 0x105   :  { %v520_v18 = vpop.f32.mrb[0].mxu0 }
 0x106   :  { %v521_v19 = vpop.f32.mrb[1].mxu0 }
 0x107   :  { %v522_v20 = vadd.f32 %v521_v19, %v520_v18 }
 0x109   :  { %v177_v21 = vadd.f32 %v522_v20, %v176_v14 }
 0x10b   :  { %v251_v22 = vadd.f32 %v250_v16, %v177_v21 }
 0x10e   :  { %v555_v23 = vpop.f32.mrb[4].mxu1 }
 0x10f   :  { %v556_v24 = vpop.f32.mrb[5].mxu1 }
 0x110   :  { %v557_v25 = vadd.f32 %v556_v24, %v555_v23 }
 0x112   :  { %v327_v26 = vadd.f32 %v557_v25, %v251_v22  ;;  %v398_v27 = vpop.f32.mrb[6].mxu1 }
 0x113   :  { %v400_v28 = vpop.f32.mrb[7].mxu1 }
 0x114   :  { %v399_v29 = vadd.f32 %v398_v27, %v327_v26 }
 0x125   :  { %v590_v30 = vpop.f32.mrb[2].mxu0 }
 0x126   :  { %v591_v31 = vpop.f32.mrb[3].mxu0 }
 0x127   :  { %v592_v32 = vadd.f32 %v591_v31, %v590_v30 }
 0x129   :  { %v471_v33 = vadd.f32 %v592_v32, %v399_v29 }
 0x12b   :  { %v480_v34 = vmul.f32 0.00390625, %v471_v33 }
 0x12d   :  { %482 = vst.msk [vmem:[%s757_s1] sm:$0xff] %vm481_vm0, %v480_v34 }
 0x12e   :  { %487 = vsyncpa [#allocation4], 1 }

</bundles_post_ra>
